<compile_context>
chip_gen: v7x
topology: tpu7x:2x2x1
jax: 0.10.0
libtpu: 0.0.40
codegen_flags: <defaults>
</compile_context>

<pallas_src>
import functools

import jax
import jax.numpy as jnp
from jax.experimental import pallas as pl
from jax.experimental.pallas import tpu as pltpu

ALPHA = 0.25
GAMMA = 2.0

_LANES = 128
_SUBLANES = 8
_TARGET_BLOCK_ROWS = 8192   # (8192,128) f32 block = 4 MiB; 2 inputs x 2 bufs = 16 MiB VMEM


def _round_up(x, m):
    return ((x + m - 1) // m) * m


def _num_tensorcores():
    """TensorCores one Pallas kernel can span on this chip (2 on v7x, else 1)."""
    try:
        kind = jax.devices()[0].device_kind.lower()
    except Exception:
        return 1
    return 2 if "v7" in kind else 1


def _focal_kernel(p_ref, t_ref, out_ref, *, alpha, gamma, n_valid,
                  block_rows, steps_per_split, split_grid):
    if split_grid:
        c = pl.program_id(0)          # core-split index
        j = pl.program_id(1)          # block index within this split
        blk = c * steps_per_split + j  # logical (unclamped) block index
        first = j == 0
    else:
        blk = pl.program_id(0)
        first = blk == 0

    @pl.when(first)
    def _():
        out_ref[...] = jnp.zeros_like(out_ref)

    x = p_ref[...].astype(jnp.float32)   # logits
    t = t_ref[...].astype(jnp.float32)   # targets in [0, 1]

    # Numerically stable BCE-with-logits, sharing a single exp:
    #   bce = max(x, 0) - x*t + log(1 + exp(-|x|))
    e = jnp.exp(-jnp.abs(x))                       # exp(-|x|) in (0, 1]
    bce = jnp.maximum(x, 0.0) - x * t + jnp.log1p(e)

    # sigmoid(x) from the same exp; approx reciprocal (EUP) + one Newton step
    # keeps full f32 accuracy while freeing VALU slots.
    d = 1.0 + e
    r = pl.reciprocal(d, approx=True)
    r = r * (2.0 - d * r)                          # Newton-Raphson refinement
    p = jnp.where(x >= 0.0, r, e * r)
    q = 1.0 - p

    # gamma == 2.0 specialization: VPU squares instead of float pow.
    if gamma == 2.0:
        p_pow = p * p
        q_pow = q * q
    else:  # generic fallback for non-integer gamma
        p_pow = p ** gamma
        q_pow = q ** gamma

    # Matches the PyTorch module: positive weight alpha, negative weight 1.0.
    focal = bce * (alpha * t * q_pow + (1.0 - t) * p_pow)

    block_elems = block_rows * _LANES
    start = blk * block_elems                      # global flat offset (logical)
    needs_mask = start + block_elems > n_valid     # ragged / phantom tail block

    def _accumulate(vals):
        # (block_rows, 128) -> (8, 128) partial sums: pure vreg adds (no XLU),
        # accumulated into the resident output block.
        v3 = vals.reshape(block_rows // _SUBLANES, _SUBLANES, _LANES)
        out_ref[...] += jnp.sum(v3, axis=0)

    @pl.when(needs_mask)
    def _():
        row_ids = jax.lax.broadcasted_iota(jnp.int32, (block_rows, _LANES), 0)
        lane_ids = jax.lax.broadcasted_iota(jnp.int32, (block_rows, _LANES), 1)
        flat_idx = start + row_ids * _LANES + lane_ids
        _accumulate(jnp.where(flat_idx < n_valid, focal, 0.0))

    @pl.when(jnp.logical_not(needs_mask))
    def _():
        _accumulate(focal)


def bce_focal_loss(preds, targets, alpha=ALPHA, gamma=GAMMA):
    """Mean BCE focal loss over all elements of `preds`/`targets` (same shape).

    Inputs are streamed in their incoming dtype (pass bf16 logits / low-precision
    targets unconverted for the bandwidth win); the kernel casts tiles to f32.
    """
    assert preds.shape == targets.shape
    n = int(preds.size)
    if n == 0:
        return jnp.float32(0.0)

    p_flat = preds.reshape(-1)
    t_flat = targets.reshape(-1)

    rows = pl.cdiv(n, _LANES)
    rows_p = _round_up(rows, _SUBLANES)
    pad = rows_p * _LANES - n
    if pad > 0:  # <= 1023 elements; zero-copy fast path when n % 1024 == 0
        p_flat = jnp.pad(p_flat, (0, pad))
        t_flat = jnp.pad(t_flat, (0, pad))
    p2 = p_flat.reshape(rows_p, _LANES)
    t2 = t_flat.reshape(rows_p, _LANES)

    num_splits = _num_tensorcores()
    split_grid = num_splits > 1

    # Pick block_rows so the grid covers rows_p with minimal overshoot (no array
    # padding; overshoot lands in a ragged/masked tail) and blocks stay large.
    steps_est = max(1, pl.cdiv(rows_p, num_splits * _TARGET_BLOCK_ROWS))
    block_rows = _round_up(pl.cdiv(rows_p, num_splits * steps_est), _SUBLANES)
    total_blocks = pl.cdiv(rows_p, block_rows)
    steps_per_split = pl.cdiv(total_blocks, num_splits)

    kernel = functools.partial(
        _focal_kernel, alpha=float(alpha), gamma=float(gamma), n_valid=n,
        block_rows=block_rows, steps_per_split=steps_per_split,
        split_grid=split_grid)

    if split_grid:
        grid = (num_splits, steps_per_split)

        def in_idx(c, j):
            # Clamp so a phantom block (uneven split) re-reads the last real
            # block; the kernel masks it by its *logical* offset, so it adds 0.
            return (jnp.minimum(c * steps_per_split + j, total_blocks - 1), 0)

        def out_idx(c, j):
            return (c, 0)

        semantics = ("parallel", "arbitrary")
    else:
        grid = (total_blocks,)

        def in_idx(j):
            return (j, 0)

        def out_idx(j):
            return (0, 0)

        semantics = ("arbitrary",)

    in_spec = pl.BlockSpec((block_rows, _LANES), in_idx)
    out_spec = pl.BlockSpec((_SUBLANES, _LANES), out_idx)

    bytes_in = int(p2.size * p2.dtype.itemsize + t2.size * t2.dtype.itemsize)
    cost = pl.CostEstimate(
        flops=18 * n,
        transcendentals=2 * n,
        bytes_accessed=bytes_in + num_splits * _SUBLANES * _LANES * 4,
    )

    partials = pl.pallas_call(
        kernel,
        out_shape=jax.ShapeDtypeStruct((num_splits * _SUBLANES, _LANES), jnp.float32),
        grid_spec=pltpu.PrefetchScalarGridSpec(
            num_scalar_prefetch=0,
            grid=grid,
            in_specs=[in_spec, in_spec],
            out_specs=out_spec,
        ),
        compiler_params=pltpu.CompilerParams(
            dimension_semantics=semantics,
            vmem_limit_bytes=40 * 1024 * 1024,
        ),
        cost_estimate=cost,
    )(p2, t2)

    return jnp.sum(partials) / jnp.float32(n)


def _reference(preds, targets, alpha=ALPHA, gamma=GAMMA):
    x = preds.astype(jnp.float32)
    t = targets.astype(jnp.float32)
    bce = jnp.maximum(x, 0.0) - x * t + jnp.log1p(jnp.exp(-jnp.abs(x)))
    p = jax.nn.sigmoid(x)
    loss = t * alpha * (1.0 - p) ** gamma * bce + (1.0 - t) * p ** gamma * bce
    return jnp.mean(loss)


if __name__ == "__main__":
    key = jax.random.PRNGKey(0)
    k1, k2 = jax.random.split(key)

    # NCHW: batch=2, channels=4, spatial=16x16
    preds = jax.random.normal(k1, (2, 4, 16, 16), dtype=jnp.float32)
    targets = (jax.random.uniform(k2, (2, 4, 16, 16)) > 0.5).astype(jnp.float32)

    out = bce_focal_loss(preds, targets)
    jax.block_until_ready(out)

    ref = _reference(preds, targets)
    assert jnp.allclose(out, ref, atol=1e-5, rtol=1e-5), (out, ref)

    print("KERNEL_OK")
</pallas_src>

<mosaic_0001>
module attributes {stable_mosaic.version = 11 : i64} {
  func.func @_focal_kernel(%arg0: i32, %arg1: memref<16x128xf32, #tpu.memory_space<vmem>>, %arg2: memref<16x128xf32, #tpu.memory_space<vmem>>, %arg3: memref<8x128xf32, #tpu.memory_space<vmem>>) attributes {dimension_semantics = [#tpu.dimension_semantics<arbitrary>], iteration_bounds = array<i64: 1>, scalar_prefetch = 0 : i64, scratch_operands = 0 : i64, tpu.core_type = #tpu.core_type<tc>, window_params = [{transform_indices = @transform_0, window_bounds = array<i64: 16, 128>}, {transform_indices = @transform_1, window_bounds = array<i64: 16, 128>}, {pipeline_mode = #tpu.pipeline_mode<synchronous>, transform_indices = @transform_2, window_bounds = array<i64: 8, 128>}]} {
    %c0_i32 = arith.constant 0 : i32
    %0 = arith.cmpi eq, %arg0, %c0_i32 : i32
    %1 = arith.extui %0 : i1 to i32
    %c0_i32_0 = arith.constant 0 : i32
    %2 = arith.cmpi ne, %1, %c0_i32_0 : i32
    scf.if %2 {
      %cst_15 = arith.constant 0.000000e+00 : f32
      %46 = vector.broadcast %cst_15 : f32 to vector<8x128xf32>
      %c0_16 = arith.constant 0 : index
      %c0_17 = arith.constant 0 : index
      %47 = vector.load %arg3[%c0_16, %c0_17] : memref<8x128xf32, #tpu.memory_space<vmem>>, vector<8x128xf32>
      tpu.vector_store %arg3[%c0_16, %c0_17], %46 {strides = array<i32>} : memref<8x128xf32, #tpu.memory_space<vmem>>, vector<8x128xf32>,
    } else {
    }
    %c0 = arith.constant 0 : index
    %c0_1 = arith.constant 0 : index
    %3 = vector.load %arg1[%c0, %c0_1] : memref<16x128xf32, #tpu.memory_space<vmem>>, vector<16x128xf32>
    %c0_2 = arith.constant 0 : index
    %c0_3 = arith.constant 0 : index
    %4 = vector.load %arg2[%c0_2, %c0_3] : memref<16x128xf32, #tpu.memory_space<vmem>>, vector<16x128xf32>
    %5 = math.absf %3 : vector<16x128xf32>
    %cst = arith.constant 0.000000e+00 : f32
    %6 = vector.broadcast %cst : f32 to vector<16x128xf32>
    %7 = arith.subf %6, %5 : vector<16x128xf32>
    %8 = math.exp %7 : vector<16x128xf32>
    %cst_4 = arith.constant 0.000000e+00 : f32
    %9 = vector.broadcast %cst_4 : f32 to vector<16x128xf32>
    %10 = arith.maximumf %3, %9 : vector<16x128xf32>
    %11 = arith.mulf %3, %4 : vector<16x128xf32>
    %12 = arith.subf %10, %11 : vector<16x128xf32>
    %13 = math.log1p %8 : vector<16x128xf32>
    %14 = arith.addf %12, %13 : vector<16x128xf32>
    %cst_5 = arith.constant 1.000000e+00 : f32
    %15 = vector.broadcast %cst_5 : f32 to vector<16x128xf32>
    %16 = arith.addf %15, %8 : vector<16x128xf32>
    %17 = tpu.reciprocal %16 {approx = true} : vector<16x128xf32> -> vector<16x128xf32>
    %18 = arith.mulf %16, %17 : vector<16x128xf32>
    %cst_6 = arith.constant 2.000000e+00 : f32
    %19 = vector.broadcast %cst_6 : f32 to vector<16x128xf32>
    %20 = arith.subf %19, %18 : vector<16x128xf32>
    %21 = arith.mulf %17, %20 : vector<16x128xf32>
    %cst_7 = arith.constant 0.000000e+00 : f32
    %22 = vector.broadcast %cst_7 : f32 to vector<16x128xf32>
    %23 = arith.cmpf oge, %3, %22 : vector<16x128xf32>
    %24 = arith.mulf %8, %21 : vector<16x128xf32>
    %25 = arith.select %23, %21, %24 : vector<16x128xi1>, vector<16x128xf32>
    %cst_8 = arith.constant 1.000000e+00 : f32
    %26 = vector.broadcast %cst_8 : f32 to vector<16x128xf32>
    %27 = arith.subf %26, %25 : vector<16x128xf32>
    %28 = arith.mulf %25, %25 : vector<16x128xf32>
    %29 = arith.mulf %27, %27 : vector<16x128xf32>
    %cst_9 = arith.constant 2.500000e-01 : f32
    %30 = vector.broadcast %cst_9 : f32 to vector<16x128xf32>
    %31 = arith.mulf %30, %4 : vector<16x128xf32>
    %32 = arith.mulf %31, %29 : vector<16x128xf32>
    %cst_10 = arith.constant 1.000000e+00 : f32
    %33 = vector.broadcast %cst_10 : f32 to vector<16x128xf32>
    %34 = arith.subf %33, %4 : vector<16x128xf32>
    %35 = arith.mulf %34, %28 : vector<16x128xf32>
    %36 = arith.addf %32, %35 : vector<16x128xf32>
    %37 = arith.mulf %14, %36 : vector<16x128xf32>
    %c2048_i32 = arith.constant 2048 : i32
    %38 = arith.muli %arg0, %c2048_i32 : i32
    %c2048_i32_11 = arith.constant 2048 : i32
    %39 = arith.addi %38, %c2048_i32_11 : i32
    %c2048_i32_12 = arith.constant 2048 : i32
    %40 = arith.cmpi sgt, %39, %c2048_i32_12 : i32
    %41 = arith.extui %40 : i1 to i32
    %c0_i32_13 = arith.constant 0 : i32
    %42 = arith.cmpi ne, %41, %c0_i32_13 : i32
    scf.if %42 {
      %46 = tpu.iota {dimensions = array<i32: 0>} : vector<16x128xi32>
      %47 = tpu.iota {dimensions = array<i32: 1>} : vector<16x128xi32>
      %c128_i32 = arith.constant 128 : i32
      %48 = vector.broadcast %c128_i32 : i32 to vector<16x128xi32>
      %49 = arith.muli %46, %48 : vector<16x128xi32>
      %50 = vector.broadcast %38 : i32 to vector<16x128xi32>
      %51 = arith.addi %50, %49 : vector<16x128xi32>
      %52 = arith.addi %51, %47 : vector<16x128xi32>
      %c2048_i32_15 = arith.constant 2048 : i32
      %53 = vector.broadcast %c2048_i32_15 : i32 to vector<16x128xi32>
      %54 = arith.cmpi slt, %52, %53 : vector<16x128xi32>
      %cst_16 = arith.constant 0.000000e+00 : f32
      %55 = vector.broadcast %cst_16 : f32 to vector<16x128xf32>
      %56 = arith.select %54, %37, %55 : vector<16x128xi1>, vector<16x128xf32>
      %57 = vector.shape_cast %56 : vector<16x128xf32> to vector<2x8x128xf32>
      %c0_17 = arith.constant 0 : index
      %c0_18 = arith.constant 0 : index
      %58 = vector.load %arg3[%c0_17, %c0_18] : memref<8x128xf32, #tpu.memory_space<vmem>>, vector<8x128xf32>
      %cst_19 = arith.constant dense<0.000000e+00> : vector<8x128xf32>
      %59 = vector.multi_reduction <add>, %57, %cst_19 [0] : vector<2x8x128xf32> to vector<8x128xf32>
      %60 = arith.addf %58, %59 : vector<8x128xf32>
      %c0_20 = arith.constant 0 : index
      %c0_21 = arith.constant 0 : index
      %61 = vector.load %arg3[%c0_20, %c0_21] : memref<8x128xf32, #tpu.memory_space<vmem>>, vector<8x128xf32>
      tpu.vector_store %arg3[%c0_20, %c0_21], %60 {strides = array<i32>} : memref<8x128xf32, #tpu.memory_space<vmem>>, vector<8x128xf32>,
    } else {
    }
    %true = arith.constant true
    %43 = arith.xori %40, %true : i1
    %44 = arith.extui %43 : i1 to i32
    %c0_i32_14 = arith.constant 0 : i32
    %45 = arith.cmpi ne, %44, %c0_i32_14 : i32
    scf.if %45 {
      %46 = vector.shape_cast %37 : vector<16x128xf32> to vector<2x8x128xf32>
      %c0_15 = arith.constant 0 : index
      %c0_16 = arith.constant 0 : index
      %47 = vector.load %arg3[%c0_15, %c0_16] : memref<8x128xf32, #tpu.memory_space<vmem>>, vector<8x128xf32>
      %cst_17 = arith.constant dense<0.000000e+00> : vector<8x128xf32>
      %48 = vector.multi_reduction <add>, %46, %cst_17 [0] : vector<2x8x128xf32> to vector<8x128xf32>
      %49 = arith.addf %47, %48 : vector<8x128xf32>
      %c0_18 = arith.constant 0 : index
      %c0_19 = arith.constant 0 : index
      %50 = vector.load %arg3[%c0_18, %c0_19] : memref<8x128xf32, #tpu.memory_space<vmem>>, vector<8x128xf32>
      tpu.vector_store %arg3[%c0_18, %c0_19], %49 {strides = array<i32>} : memref<8x128xf32, #tpu.memory_space<vmem>>, vector<8x128xf32>,
    } else {
    }
    return
  }
  func.func @transform_0(%arg0: i32) -> (i32, i32) {
    %c0_i32 = arith.constant 0 : i32
    %c0_i32_0 = arith.constant 0 : i32
    return %arg0, %c0_i32 : i32, i32
  }
  func.func @transform_1(%arg0: i32) -> (i32, i32) {
    %c0_i32 = arith.constant 0 : i32
    %c0_i32_0 = arith.constant 0 : i32
    return %arg0, %c0_i32 : i32, i32
  }
  func.func @transform_2(%arg0: i32) -> (i32, i32) {
    %c0_i32 = arith.constant 0 : i32
    %c0_i32_0 = arith.constant 0 : i32
    %c0_i32_1 = arith.constant 0 : i32
    return %c0_i32, %c0_i32_0 : i32, i32
  }
}

</mosaic_0001>

<bundles_post_ra>
// kernel: tpu_custom_call.1
= control target key start
LH: loop header
LB: loop body
LE: loop exit
PB: predicated region body
PF: predicated region fallthrough
CT: control target
= control target key end

     0   :  { %7 = vsyncpa [#allocation3], 0  ;;  %s325_s0 = inlined_call_operand.hbm [shape: f32[16,128], index: 0, kind: input, shape index: {}]   ;;  %s326_s1 = inlined_call_operand.hbm [shape: f32[16,128], index: 1, kind: input, shape index: {}]   ;;  %s327_s2 = inlined_call_operand.hbm [shape: f32[8,128], index: 2, kind: output, shape index: {}]  }
   0x1   :  { %8 = vsyncpa [#allocation6], 0 }
   0x2   :  { %9 = vsyncpa [#allocation4], 0  ;;  %s257_s9 = smov [#allocation2]   ;;  %s185_s13 = scalar_lea.hbm %s325_s0, 256 }
   0x3   :  { %s15_s10 = sshll.u32 %s257_s9, 4  ;;  %p186_p0 = scmp.ne.s32.totalorder %s325_s0, %s185_s13  ;;  %s16_s10 = int_to_ptr.vmem [resolvable:$true] %s15_s10 }
   0x4   :  { %p189_p1 = scmp.lt.u32.totalorder %s185_s13, %s325_s0 }
   0x6   :  { %p191_p2 = pnand %p189_p1, %p186_p0 }
   0x8   :  { %194 = shalt.err (!%p191_p2)
}
   0x9   :  { %s195_s18 = scalar_lea.vmem %s16_s10, 256  ;;  %p200_p4 = scmp.lt.s32.totalorder %s16_s10, %s16_s10 }
   0xa   :  { %p196_p3 = scmp.ne.s32.totalorder %s16_s10, %s195_s18  ;;  %p201_p5 = scmp.lt.s32.totalorder %s195_s18, %s195_s18 }
   0xc   :  { %p202_p6 = por %p201_p5, %p200_p4 }
   0xe   :  { %p203_p7 = pnand %p202_p6, %p196_p3 }
  0x10   :  { %206 = shalt.err (!%p203_p7)
}
  0x11   :  { %s258_s19 = smov 128   ;;  %s259_s20 = smov 8  }
  0x12   :  { %21 = dma.hbm_to_vmem [thread:$0]  %s325_s0, 256, %s16_s10, [#allocation3], %s258_s19, %s258_s19, %s259_s20  }
  0x13   :  { %s260_s23 = smov [#allocation5]   ;;  %s207_s27 = scalar_lea.hbm %s326_s1, 256 }
  0x14   :  { %s27_s24 = sshll.u32 %s260_s23, 4  ;;  %p208_p8 = scmp.ne.s32.totalorder %s326_s1, %s207_s27  ;;  %s28_s24 = int_to_ptr.vmem [resolvable:$true] %s27_s24 }
  0x15   :  { %p211_p9 = scmp.lt.u32.totalorder %s207_s27, %s326_s1 }
  0x17   :  { %p213_p10 = pnand %p211_p9, %p208_p8 }
  0x19   :  { %216 = shalt.err (!%p213_p10)
}
  0x1a   :  { %s217_s4 = scalar_lea.vmem %s28_s24, 256  ;;  %p222_p12 = scmp.lt.s32.totalorder %s28_s24, %s28_s24 }
  0x1b   :  { %p218_p11 = scmp.ne.s32.totalorder %s28_s24, %s217_s4  ;;  %p223_p13 = scmp.lt.s32.totalorder %s217_s4, %s217_s4 }
  0x1d   :  { %p224_p0 = por %p223_p13, %p222_p12 }
  0x1f   :  { %p225_p1 = pnand %p224_p0, %p218_p11 }
  0x21   :  { %228 = shalt.err (!%p225_p1)
}
  0x22   :  { %33 = dma.hbm_to_vmem [thread:$0]  %s326_s1, 256, %s28_s24, [#allocation6], %s258_s19, %s258_s19, %s259_s20  }
  0x23   :  { %251 = dma.done.wait [#allocation3], 256  }
  0x24   :  { %252 = vsyncadd [#allocation3], 4294967040 }
  0x25   :  { %253 = dma.done.wait [#allocation6], 256  }
  0x26   :  { %254 = vsyncadd [#allocation6], 4294967040  ;;  %v45_v0 = vld [vmem:[#allocation2] sm:$0xff]  ;;  %v46_v1 = vld [vmem:[#allocation2 + $0x8] sm:$0xff]  ;;  %s261_s1 = smov [#allocation7]  }
  0x27   :  { %v49_v2 = vand.u32 2147483647, %v45_v0  ;;  %v50_v3 = vand.u32 2147483647, %v46_v1  ;;  %v47_v12 = vld [vmem:[#allocation5] sm:$0xff]  ;;  %v48_v18 = vld [vmem:[#allocation5 + $0x8] sm:$0xff] }
  0x28   :  { %v57_v19 = vmax.f32 %v45_v0, 0.0  ;;  %v59_v20 = vmul.f32 %v47_v12, %v45_v0  ;;  %v58_v29 = vmax.f32 %v46_v1, 0.0  ;;  %v60_v30 = vmul.f32 %v48_v18, %v46_v1  ;;  %s157_s6 = sshll.u32 %s261_s1, 4  ;;  %s158_s6 = int_to_ptr.vmem [resolvable:$true] %s157_s6 }
  0x29   :  { %v51_v4 = vsub.f32 0.0, %v49_v2  ;;  %v52_v5 = vsub.f32 0.0, %v50_v3  ;;  %vm93_vm0 = vcmp.ge.f32.partialorder %v45_v0, 0.0  ;;  %vm94_vm1 = vcmp.ge.f32.partialorder %v46_v1, 0.0  ;;  %s229_s7 = scalar_lea.vmem %s158_s6, 128  ;;  %p234_p3 = scmp.lt.s32.totalorder %s158_s6, %s158_s6 }
  0x2a   :  { %v61_v33 = vsub.f32 %v57_v19, %v59_v20  ;;  %v109_v38 = vsub.f32 1.0, %v47_v12  ;;  %v105_v45 = vmul.f32 0.25, %v47_v12  ;;  %v110_v46 = vsub.f32 1.0, %v48_v18  ;;  %p230_p2 = scmp.ne.s32.totalorder %s158_s6, %s229_s7  ;;  %p235_p4 = scmp.lt.s32.totalorder %s229_s7, %s229_s7 }
  0x2b   :  { %v53_v6 = vmul.f32 1.442695, %v51_v4  ;;  %v55_v7 = vmul.f32 1.442695, %v52_v5  ;;  %v62_v47 = vsub.f32 %v58_v29, %v60_v30  ;;  %v106_v54 = vmul.f32 0.25, %v48_v18 }
  0x2c   :  { %p236_p5 = por %p235_p4, %p234_p3 }
  0x2d   :  { %173 = vpow2.f32 %v53_v6 }
  0x2e   :  { %175 = vpow2.f32 %v55_v7  ;;  %p237_p6 = pnand %p236_p5, %p230_p2 }
  0x37   :  { %v174_v8 = vpop.eup %173 }
  0x38   :  { %v176_v9 = vpop.eup %175  ;;  %v63_v10 = vadd.f32 1.0, %v174_v8  ;;  %v66_v13 = vmul.f32 -0.5, %v174_v8  ;;  %v69_v25 = vand.u32 2147483647, %v174_v8 }
  0x39   :  { %v72_v11 = vadd.f32 1.0, %v176_v9  ;;  %v75_v15 = vmul.f32 -0.5, %v176_v9  ;;  %v78_v31 = vand.u32 2147483647, %v176_v9 }
  0x3a   :  { %177 = vrcp.f32 %v63_v10  ;;  %v67_v22 = vadd.f32 1.0, %v66_v13  ;;  %vm301_vm2 = vcmp.lt.f32.partialorder %v69_v25, 0.0004427343 }
  0x3b   :  { %179 = vrcp.f32 %v72_v11  ;;  %v76_v26 = vadd.f32 1.0, %v75_v15  ;;  %vm305_vm3 = vcmp.lt.f32.partialorder %v78_v31, 0.0004427343 }
  0x3c   :  { %181 = vlog2.f32 %v63_v10  ;;  %v68_v36 = vmul.f32 %v174_v8, %v67_v22 }
  0x3d   :  { %183 = vlog2.f32 %v72_v11  ;;  %v77_v41 = vmul.f32 %v176_v9, %v76_v26 }
  0x44   :  { %v178_v14 = vpop.eup %177 }
  0x45   :  { %v180_v16 = vpop.eup %179  ;;  %v87_v17 = vmul.f32 %v178_v14, %v63_v10 }
  0x46   :  { %v88_v21 = vmul.f32 %v180_v16, %v72_v11  ;;  %v182_v24 = vpop.eup %181 }
  0x47   :  { %v89_v23 = vsub.f32 2.0, %v87_v17  ;;  %v184_v28 = vpop.eup %183  ;;  %v65_v35 = vmul.f32 0.6931472, %v182_v24 }
  0x48   :  { %v90_v27 = vsub.f32 2.0, %v88_v21  ;;  %v74_v40 = vmul.f32 0.6931472, %v184_v28 }
  0x49   :  { %v91_v32 = vmul.f32 %v178_v14, %v89_v23  ;;  %v71_v51 = vsel %vm301_vm2, %v68_v36, %v65_v35 }
  0x4a   :  { %v92_v34 = vmul.f32 %v180_v16, %v90_v27  ;;  %v80_v55 = vsel %vm305_vm3, %v77_v41, %v74_v40  ;;  %v81_v60 = vadd.f32 %v71_v51, %v61_v33 }
  0x4b   :  { %v95_v37 = vmul.f32 %v174_v8, %v91_v32  ;;  %v82_v62 = vadd.f32 %v80_v55, %v62_v47 }
  0x4c   :  { %v96_v42 = vmul.f32 %v176_v9, %v92_v34 }
  0x4d   :  { %v97_v44 = vsel %vm93_vm0, %v91_v32, %v95_v37 }
  0x4e   :  { %v98_v48 = vsel %vm94_vm1, %v92_v34, %v96_v42  ;;  %v99_v49 = vsub.f32 1.0, %v97_v44  ;;  %v101_v50 = vmul.f32 %v97_v44, %v97_v44 }
  0x4f   :  { %v100_v52 = vsub.f32 1.0, %v98_v48  ;;  %v102_v53 = vmul.f32 %v98_v48, %v98_v48 }
  0x50   :  { %v103_v56 = vmul.f32 %v99_v49, %v99_v49  ;;  %v111_v57 = vmul.f32 %v109_v38, %v101_v50 }
  0x51   :  { %v104_v58 = vmul.f32 %v100_v52, %v100_v52  ;;  %v112_v59 = vmul.f32 %v110_v46, %v102_v53 }
  0x52   :  { %v107_v61 = vmul.f32 %v105_v45, %v103_v56 }
  0x53   :  { %v108_v63 = vmul.f32 %v106_v54, %v104_v58 }
  0x54   :  { %v113_v0 = vadd.f32 %v111_v57, %v107_v61 }
  0x55   :  { %v114_v1 = vadd.f32 %v112_v59, %v108_v63 }
  0x56   :  { %v115_v2 = vmul.f32 %v113_v0, %v81_v60 }
  0x57   :  { %v116_v3 = vmul.f32 %v114_v1, %v82_v62 }
  0x59   :  { %v148_v4 = vadd.f32 %v116_v3, %v115_v2 }
  0x5b   :  { %150 = vst [vmem:[#allocation7] sm:$0xff] %v148_v4 }
  0x5c   :  { %240 = shalt.err (!%p237_p6)
}
  0x5d   :  { %s241_s10 = scalar_lea.hbm %s327_s2, 128 }
  0x5e   :  { %p242_p7 = scmp.ne.s32.totalorder %s327_s2, %s241_s10  ;;  %p245_p8 = scmp.lt.u32.totalorder %s241_s10, %s327_s2 }
  0x60   :  { %p247_p9 = pnand %p245_p8, %p242_p7 }
  0x62   :  { %250 = shalt.err (!%p247_p9)
}
  0x63   :  { %160 = dma.vmem_to_hbm [thread:$0]  %s158_s6, 128, %s327_s2, [#allocation4]  }
  0x64   :  { %255 = dma.done.wait [#allocation4], 128  }
  0x65   :  { %256 = vsyncadd [#allocation4], 4294967168 }
  0x66   :  { %164 = vsyncpa [#allocation3], 1 }
  0x67   :  { %165 = vsyncpa [#allocation6], 1 }
  0x68   :  { %166 = vsyncpa [#allocation4], 1 }

</bundles_post_ra>
